<compile_context>
chip_gen: v7x
topology: tpu7x:2x2x1
jax: 0.10.0
libtpu: 0.0.40
codegen_flags: <defaults>
</compile_context>

<pallas_src>
import functools

import jax
import jax.numpy as jnp
from jax.experimental import pallas as pl
from jax.experimental.pallas import tpu as pltpu


def _focal_loss_kernel(x_ref, tgt_ref, alpha_ref, out_ref, *,
                       gamma, hw, tl, need_mask):
    x = x_ref[...].astype(jnp.float32)            # (1, C, TL) logits
    tgt = tgt_ref[...]                            # (1, 1, TL) int32 class ids

    # log_softmax along the class (sublane) axis.
    m = jnp.max(x, axis=1, keepdims=True)         # (1, 1, TL)
    z = x - m                                     # (1, C, TL)
    lse = jnp.log(jnp.sum(jnp.exp(z), axis=1, keepdims=True))   # (1, 1, TL)

    # Gather of the target-class log-prob via a one-hot compare over sublanes
    # (C is small and fully resident; no dynamic gather needed on TPU).
    cls = jax.lax.broadcasted_iota(jnp.int32, x.shape, 1)        # (1, C, TL)
    onehot = (cls == tgt).astype(jnp.float32)                    # (1, C, TL)

    logpt = jnp.sum(z * onehot, axis=1, keepdims=True) - lse     # (1, 1, TL)
    pt = jnp.exp(logpt)                                          # (1, 1, TL)

    # alpha gather: at = alpha[target]
    at = jnp.sum(alpha_ref[...].astype(jnp.float32) * onehot,
                 axis=1, keepdims=True)                          # (1, 1, TL)
    logpt = logpt * at

    # (1 - pt) ** gamma, with small integer gammas unrolled into multiplies.
    q = 1.0 - pt
    g = float(gamma)
    if g == 0.0:
        w = jnp.ones_like(q)
    elif g.is_integer() and 0.0 < g <= 4.0:
        w = q
        for _ in range(int(g) - 1):
            w = w * q
    else:
        w = q ** g

    loss = -1.0 * w * logpt                                      # (1, 1, TL)

    if need_mask:
        # Zero the padded spatial tail of the last tile.  Use where (not *)
        # so garbage/NaN in the padding region cannot poison the sum.
        lane = jax.lax.broadcasted_iota(jnp.int32, loss.shape, 2)
        valid = (pl.program_id(1) * tl + lane) < hw
        loss = jnp.where(valid, loss, 0.0)

    partial = jnp.sum(loss)                                      # scalar

    # Write one lane-dense, vreg-aligned (1,1,8,128) partial block: the
    # partial sum in element [0,0], zeros elsewhere (summed away outside).
    r = jax.lax.broadcasted_iota(jnp.int32, out_ref.shape, 2)
    l = jax.lax.broadcasted_iota(jnp.int32, out_ref.shape, 3)
    out_ref[...] = jnp.where((r == 0) & (l == 0), partial, 0.0)


def focal_loss(x, target, *, gamma=0.0, alpha=None, size_average=True):
    """Pallas equivalent of FocalLoss.forward(input, target)."""
    if x.ndim > 2:
        n, c = x.shape[0], x.shape[1]
        x3 = x.reshape(n, c, -1)                 # (N, C, HW): view, no copy
    else:
        # 2-D (M, C) corner case: present as (1, C, M) so the class axis
        # sits on sublanes (pays one small XLA transpose).
        m_rows, c = x.shape
        n = 1
        x3 = x.T.reshape(1, c, m_rows)
    hw = x3.shape[2]

    tgt = target.reshape(n, 1, hw).astype(jnp.int32)

    if alpha is None:
        alpha_col = jnp.ones((1, c, 1), jnp.float32)          # at == 1 everywhere
    elif isinstance(alpha, (float, int)):
        alpha_col = jnp.asarray([alpha, 1.0 - alpha], jnp.float32).reshape(1, -1, 1)
    else:
        alpha_col = jnp.asarray(alpha, jnp.float32).reshape(1, -1, 1)
    if alpha_col.shape[1] != c:
        raise ValueError(
            f"alpha has {alpha_col.shape[1]} entries but input has {c} classes")

    # Spatial tile: lane-dense, ~1 MiB of logits per grid step (amortizes the
    # ~0.35us per-step pipeline overhead) while leaving headroom for in-kernel
    # temporaries under every chip's scoped VMEM (v5e 16 MiB default, v6e/v7x
    # 32 MiB; limit set explicitly to 32 MiB below).
    itemsize = x3.dtype.itemsize
    target_block_bytes = 1 * 1024 * 1024
    tl = max(128, (target_block_bytes // (c * itemsize)) // 128 * 128)
    tl = min(tl, pl.cdiv(hw, 128) * 128)
    grid_j = pl.cdiv(hw, tl)
    need_mask = (hw % tl) != 0

    kernel = functools.partial(_focal_loss_kernel, gamma=float(gamma),
                               hw=hw, tl=tl, need_mask=need_mask)

    partials = pl.pallas_call(
        kernel,
        out_shape=jax.ShapeDtypeStruct((n, grid_j, 8, 128), jnp.float32),
        grid_spec=pltpu.PrefetchScalarGridSpec(
            num_scalar_prefetch=0,
            grid=(n, grid_j),
            in_specs=[
                pl.BlockSpec((1, c, tl), lambda i, j: (i, 0, j)),   # logits
                pl.BlockSpec((1, 1, tl), lambda i, j: (i, 0, j)),   # targets
                pl.BlockSpec((1, c, 1), lambda i, j: (0, 0, 0)),    # alpha
            ],
            out_specs=pl.BlockSpec((1, 1, 8, 128), lambda i, j: (i, j, 0, 0)),
        ),
        compiler_params=pltpu.CompilerParams(
            dimension_semantics=("parallel", "parallel"),
            vmem_limit_bytes=32 * 1024 * 1024),
    )(x3, tgt, alpha_col)

    total = jnp.sum(partials)
    if size_average:
        return total / jnp.float32(n * hw)
    return total


if __name__ == "__main__":
    key = jax.random.PRNGKey(0)
    kx, kt = jax.random.split(key)

    # NCHW logits, class-index targets (one per spatial location).
    N, C, H, W = 2, 4, 16, 16
    x = jax.random.normal(kx, (N, C, H, W), dtype=jnp.float32)
    target = jax.random.randint(kt, (N, H, W), 0, C, dtype=jnp.int32)

    gamma = 2.0
    alpha = [0.1, 0.2, 0.3, 0.4]   # per-class alpha (list path in __init__)

    loss = focal_loss(x, target, gamma=gamma, alpha=alpha, size_average=True)
    jax.block_until_ready(loss)

    # Sanity check against a plain-JAX reference of the same math.
    x2 = x.reshape(N, C, -1).transpose(0, 2, 1).reshape(-1, C)
    t = target.reshape(-1)
    logsm = jax.nn.log_softmax(x2, axis=-1)
    logpt = jnp.take_along_axis(logsm, t[:, None], axis=1)[:, 0]
    pt = jnp.exp(logpt)
    at = jnp.asarray(alpha, jnp.float32)[t]
    ref = jnp.mean(-1.0 * (1.0 - pt) ** gamma * (logpt * at))
    assert jnp.allclose(loss, ref, atol=1e-5, rtol=1e-5), (loss, ref)

    # Also exercise the gamma=0 / alpha=None / sum path once.
    loss2 = focal_loss(x, target, gamma=0.0, alpha=None, size_average=False)
    ref2 = jnp.sum(-logpt)
    jax.block_until_ready(loss2)
    assert jnp.allclose(loss2, ref2, atol=1e-4, rtol=1e-5), (loss2, ref2)

    print("KERNEL_OK")
</pallas_src>

<mosaic_0001>
module attributes {stable_mosaic.version = 11 : i64} {
  func.func @_focal_loss_kernel(%arg0: i32, %arg1: i32, %arg2: memref<1x4x256xf32, #tpu.memory_space<vmem>>, %arg3: memref<1x1x256xi32, #tpu.memory_space<vmem>>, %arg4: memref<1x4x1xf32, #tpu.memory_space<vmem>>, %arg5: memref<1x1x8x128xf32, #tpu.memory_space<vmem>>) attributes {dimension_semantics = [#tpu.dimension_semantics<parallel>, #tpu.dimension_semantics<parallel>], iteration_bounds = array<i64: 2, 1>, scalar_prefetch = 0 : i64, scratch_operands = 0 : i64, tpu.core_type = #tpu.core_type<tc>, window_params = [{transform_indices = @transform_0, window_bounds = array<i64: 1, 4, 256>}, {transform_indices = @transform_1, window_bounds = array<i64: 1, 1, 256>}, {pipeline_mode = #tpu.pipeline_mode<synchronous>, transform_indices = @transform_2, window_bounds = array<i64: 1, 4, 1>}, {transform_indices = @transform_3, window_bounds = array<i64: 1, 1, 8, 128>}]} {
    %c0 = arith.constant 0 : index
    %c0_0 = arith.constant 0 : index
    %c0_1 = arith.constant 0 : index
    %0 = vector.load %arg2[%c0, %c0_0, %c0_1] : memref<1x4x256xf32, #tpu.memory_space<vmem>>, vector<1x4x256xf32>
    %c0_2 = arith.constant 0 : index
    %c0_3 = arith.constant 0 : index
    %c0_4 = arith.constant 0 : index
    %1 = vector.load %arg3[%c0_2, %c0_3, %c0_4] : memref<1x1x256xi32, #tpu.memory_space<vmem>>, vector<1x1x256xi32>
    %cst = arith.constant dense<0xFF800000> : vector<1x256xf32>
    %2 = vector.multi_reduction <maximumf>, %0, %cst [1] : vector<1x4x256xf32> to vector<1x256xf32>
    %3 = vector.shape_cast %2 : vector<1x256xf32> to vector<1x1x256xf32>
    %4 = vector.broadcast %3 : vector<1x1x256xf32> to vector<1x4x256xf32>
    %5 = arith.subf %0, %4 : vector<1x4x256xf32>
    %6 = math.exp %5 : vector<1x4x256xf32>
    %cst_5 = arith.constant dense<0.000000e+00> : vector<1x256xf32>
    %7 = vector.multi_reduction <add>, %6, %cst_5 [1] : vector<1x4x256xf32> to vector<1x256xf32>
    %8 = vector.shape_cast %7 : vector<1x256xf32> to vector<1x1x256xf32>
    %9 = math.log %8 : vector<1x1x256xf32>
    %10 = tpu.iota {dimensions = array<i32: 1>} : vector<1x4x256xi32>
    %11 = vector.broadcast %1 : vector<1x1x256xi32> to vector<1x4x256xi32>
    %12 = arith.cmpi eq, %10, %11 : vector<1x4x256xi32>
    %13 = arith.extui %12 : vector<1x4x256xi1> to vector<1x4x256xi32>
    %14 = arith.sitofp %13 : vector<1x4x256xi32> to vector<1x4x256xf32>
    %15 = arith.mulf %5, %14 : vector<1x4x256xf32>
    %cst_6 = arith.constant dense<0.000000e+00> : vector<1x256xf32>
    %16 = vector.multi_reduction <add>, %15, %cst_6 [1] : vector<1x4x256xf32> to vector<1x256xf32>
    %17 = vector.shape_cast %16 : vector<1x256xf32> to vector<1x1x256xf32>
    %18 = arith.subf %17, %9 : vector<1x1x256xf32>
    %19 = math.exp %18 : vector<1x1x256xf32>
    %c0_7 = arith.constant 0 : index
    %c0_8 = arith.constant 0 : index
    %c0_9 = arith.constant 0 : index
    %20 = vector.load %arg4[%c0_7, %c0_8, %c0_9] : memref<1x4x1xf32, #tpu.memory_space<vmem>>, vector<1x4x1xf32>
    %21 = vector.broadcast %20 : vector<1x4x1xf32> to vector<1x4x256xf32>
    %22 = arith.mulf %21, %14 : vector<1x4x256xf32>
    %cst_10 = arith.constant dense<0.000000e+00> : vector<1x256xf32>
    %23 = vector.multi_reduction <add>, %22, %cst_10 [1] : vector<1x4x256xf32> to vector<1x256xf32>
    %24 = vector.shape_cast %23 : vector<1x256xf32> to vector<1x1x256xf32>
    %25 = arith.mulf %18, %24 : vector<1x1x256xf32>
    %cst_11 = arith.constant 1.000000e+00 : f32
    %26 = vector.broadcast %cst_11 : f32 to vector<1x1x256xf32>
    %27 = arith.subf %26, %19 : vector<1x1x256xf32>
    %28 = arith.mulf %27, %27 : vector<1x1x256xf32>
    %cst_12 = arith.constant -1.000000e+00 : f32
    %29 = vector.broadcast %cst_12 : f32 to vector<1x1x256xf32>
    %30 = arith.mulf %29, %28 : vector<1x1x256xf32>
    %31 = arith.mulf %30, %25 : vector<1x1x256xf32>
    %32 = vector.shape_cast %31 : vector<1x1x256xf32> to vector<1x1x1x256xf32>
    %cst_13 = arith.constant dense<0.000000e+00> : vector<1xf32>
    %33 = vector.multi_reduction <add>, %32, %cst_13 [1, 2, 3] : vector<1x1x1x256xf32> to vector<1xf32>
    %34 = vector.shape_cast %33 : vector<1xf32> to vector<1x1x1x1xf32>
    %35 = vector.extract %34[0, 0, 0, 0] : f32 from vector<1x1x1x1xf32>
    %36 = tpu.iota {dimensions = array<i32: 2>} : vector<1x1x8x128xi32>
    %37 = tpu.iota {dimensions = array<i32: 3>} : vector<1x1x8x128xi32>
    %c0_i32 = arith.constant 0 : i32
    %38 = vector.broadcast %c0_i32 : i32 to vector<1x1x8x128xi32>
    %39 = arith.cmpi eq, %36, %38 : vector<1x1x8x128xi32>
    %c0_i32_14 = arith.constant 0 : i32
    %40 = vector.broadcast %c0_i32_14 : i32 to vector<1x1x8x128xi32>
    %41 = arith.cmpi eq, %37, %40 : vector<1x1x8x128xi32>
    %42 = arith.andi %39, %41 : vector<1x1x8x128xi1>
    %cst_15 = arith.constant 0.000000e+00 : f32
    %43 = vector.broadcast %35 : f32 to vector<1x1x8x128xf32>
    %44 = vector.broadcast %cst_15 : f32 to vector<1x1x8x128xf32>
    %45 = arith.select %42, %43, %44 : vector<1x1x8x128xi1>, vector<1x1x8x128xf32>
    %c0_16 = arith.constant 0 : index
    %c0_17 = arith.constant 0 : index
    %c0_18 = arith.constant 0 : index
    %c0_19 = arith.constant 0 : index
    %46 = vector.load %arg5[%c0_16, %c0_17, %c0_18, %c0_19] : memref<1x1x8x128xf32, #tpu.memory_space<vmem>>, vector<1x1x8x128xf32>
    tpu.vector_store %arg5[%c0_16, %c0_17, %c0_18, %c0_19], %45 {strides = array<i32>} : memref<1x1x8x128xf32, #tpu.memory_space<vmem>>, vector<1x1x8x128xf32>,
    return
  }
  func.func @transform_0(%arg0: i32, %arg1: i32) -> (i32, i32, i32) {
    %c0_i32 = arith.constant 0 : i32
    %c0_i32_0 = arith.constant 0 : i32
    return %arg0, %c0_i32, %arg1 : i32, i32, i32
  }
  func.func @transform_1(%arg0: i32, %arg1: i32) -> (i32, i32, i32) {
    %c0_i32 = arith.constant 0 : i32
    %c0_i32_0 = arith.constant 0 : i32
    return %arg0, %c0_i32, %arg1 : i32, i32, i32
  }
  func.func @transform_2(%arg0: i32, %arg1: i32) -> (i32, i32, i32) {
    %c0_i32 = arith.constant 0 : i32
    %c0_i32_0 = arith.constant 0 : i32
    %c0_i32_1 = arith.constant 0 : i32
    %c0_i32_2 = arith.constant 0 : i32
    return %c0_i32, %c0_i32_0, %c0_i32_1 : i32, i32, i32
  }
  func.func @transform_3(%arg0: i32, %arg1: i32) -> (i32, i32, i32, i32) {
    %c0_i32 = arith.constant 0 : i32
    %c0_i32_0 = arith.constant 0 : i32
    %c0_i32_1 = arith.constant 0 : i32
    return %arg0, %arg1, %c0_i32, %c0_i32_0 : i32, i32, i32, i32
  }
}

</mosaic_0001>

<bundles_post_ra>
// kernel: tpu_custom_call.1
= control target key start
LH: loop header
LB: loop body
LE: loop exit
PB: predicated region body
PF: predicated region fallthrough
CT: control target
= control target key end

     0   :  { %8 = vsyncpa [#allocation3], 0  ;;  %s931_s0 = inlined_call_operand.hbm [shape: f32[2,4,256], index: 0, kind: input, shape index: {}]   ;;  %s932_s1 = inlined_call_operand.vmem [shape: s32[2,1,256], index: 1, kind: input, shape index: {}]   ;;  %s933_s2 = inlined_call_operand.vmem [shape: f32[1,4,1], index: 2, kind: input, shape index: {}]   ;;  %s934_s3 = inlined_call_operand.hbm [shape: f32[2,1,8,128], index: 3, kind: output, shape index: {}]  }
   0x1   :  { %10 = vsyncpa [#allocation3 + $0x1], 0 }
   0x2   :  { %11 = vsyncpa [#allocation4], 0 }
   0x3   :  { %13 = vsyncpa [#allocation4 + $0x1], 0  ;;  %s730_s12 = smov 0   ;;  %s732_s13 = smov 0  }
   0x4   :  { %s734_s14 = smov 0   ;;  %s736_s15 = smov 0  }
   0x5   :  { %s738_s16 = smov 0   ;;  %s740_s17 = smov 0  }
   0x6 LB: > { %s496_s18 = sadd.s32 4294967295, %s704_s17   ;;  %s497_s19 = sadd.s32 4294967294, %s704_s17   ;;  %s704_s17 = sphi %s740_s17, %s19_s17   ;;  %s700_s16 = sphi %s738_s16, %s950_s16   ;;  %s696_s15 = sphi %s736_s15, %s949_s15   ;;  %s692_s14 = sphi %s734_s14, %s948_s14   ;;  %s688_s13 = sphi %s732_s13, %s947_s13   ;;  %s684_s12 = sphi %s730_s12, %s946_s12  }
   0x7   : > { %s31_s20 = sadd.s32 1, %s700_s16  ;;  %s40_s21 = sadd.s32 1, %s692_s14 }
   0x8   : > { %p33_p0 = scmp.ge.s32.totalorder %s31_s20, 2  ;;  %p47_p1 = scmp.ne.s32.totalorder %s692_s14, %s688_s13 }
   0x9   : > { %p48_p2 = scmp.eq.s32.totalorder %s704_s17, 0  ;;  %p53_p3 = scmp.ne.s32.totalorder %s688_s13, %s684_s12 }
   0xa   : > { %s952_s20 = smov (%p33_p0, %s31_s20), 0  ;;  %p54_p5 = scmp.eq.s32.totalorder %s496_s18, 0 }
   0xb   : > { %p771_p4 = por %p48_p2, %p47_p1  ;;  %s35_s23 = ssub.s32 %s700_s16, %s952_s20 }
   0xc   : > { %p128_p6 = scmp.eq.s32.totalorder %s496_s18, 1  ;;  %p38_p7 = scmp.eq.s32.totalorder %s35_s23, 0 }
   0xd   : > { %p777_p8 = por %p54_p5, %p53_p3  ;;  %p134_p10 = scmp.eq.s32.totalorder %s497_s19, 1 }
   0xe   : > { %p781_p9 = por %p128_p6, %p47_p1  ;;  %p528_p13 = scmp.lt.s32.totalorder %s704_s17, 2 }
   0xf   : > { %s786_s26 = scalar_select %p38_p7, %s692_s14, %s40_s21  }
  0x10   : > { %s938_s25 = scalar_select %p781_p9, 1, 0 }
  0x11   : > { %p788_p11 = por %p134_p10, %p53_p3  ;;  %s157_s28 = sand.u32 1, %s692_s14  }
  0x12   : > { %s500_s29 = sshll.u32 %s157_s28, 3  ;;  %s513_s30 = sshll.u32 %s700_s16, 7 }
  0x13   : > { %s939_s27 = scalar_select %p788_p11, 1, 0 }
  0x14   : > { %s799_s6 = scalar_lea.hbm %s931_s0, %s513_s30  ;;  %s161_s7 = scalar_lea.vmem [#allocation2], %s500_s29 }
  0x15   : > { %s171_s8 = sshll.u32 %s161_s7, 4  ;;  %p805_p0 = pnand %p528_p13, %p771_p4  ;;  %s801_s8 = int_to_ptr.vmem [resolvable:$true] %s171_s8 }
  0x16   : > { %s158_s10 = scalar_lea.sflag [#allocation3], %s157_s28  ;;  %s592_s11 = scalar_lea.hbm %s799_s6, 128 }
  0x17   : > { %p593_p3 = scmp.ne.s32.totalorder %s799_s6, %s592_s11  ;;  %p594_p5 = pneg %p805_p0 }
  0x18   : > { %s597_s21 = scalar_lea.hbm %s931_s0, 256  ;;  %p598_p4 = scmp.lt.u32.totalorder %s799_s6, %s931_s0 }
  0x19   : > { %p595_p6 = pnand %p594_p5, %p593_p3  ;;  %p599_p10 = scmp.lt.u32.totalorder %s597_s21, %s592_s11 }
  0x1a   : > { %p601_p12 = scmp.lt.u32.totalorder %s592_s11, %s799_s6 }
  0x1b   : > { %p596_p7 = pneg %p595_p6  ;;  %p600_p13 = por %p599_p10, %p598_p4 }
  0x1d   : > { %p602_p1 = por %p601_p12, %p600_p13 }
  0x1f   : > { %p603_p2 = pnand %p602_p1, %p596_p7 }
  0x21   : > { %606 = shalt.err (!%p603_p2)
}
  0x22   : > { %s607_s28 = scalar_lea.vmem %s801_s8, 128  ;;  %s706_s29 = smov [#allocation2]  }
  0x23   : > { %p608_p3 = scmp.ne.s32.totalorder %s801_s8, %s607_s28  ;;  %s612_s30 = sshll.u32 %s706_s29, 4  ;;  %s613_s30 = int_to_ptr.vmem [resolvable:$false] %s612_s30 }
  0x24   : > { %s614_s4 = scalar_lea.vmem %s613_s30, 256  ;;  %p615_p9 = scmp.lt.s32.totalorder %s801_s8, %s613_s30 }
  0x25   : > { %p610_p6 = pnand %p608_p3, %p594_p5  ;;  %p616_p4 = scmp.lt.s32.totalorder %s614_s4, %s607_s28 }
  0x27   : > { %p611_p11 = pneg %p610_p6  ;;  %p617_p10 = por %p616_p4, %p615_p9 }
  0x29   : > { %p618_p12 = pnand %p617_p10, %p611_p11 }
  0x2b   : > { %621 = shalt.err (!%p618_p12)
}
  0x2c   : > { %523 = dma.hbm_to_vmem [thread:$0]  (!%p805_p0), %s799_s6, 128, %s801_s8, %s158_s10  }
  0x2d   : > { %p941_p1 = scmp.lt.s32.totalorder %s704_s17, 3  ;;  %p942_p2 = scmp.ge.s32.totalorder %s704_s17, 1 }
  0x2f   : > { %p189_p5 = pnand %p942_p2, %p941_p1 }
  0x30   : > { %s841_s5 = sand.u32 (!%p189_p5), 1, %s688_s13  }
  0x31   : > { %192 = sbr.rel (%p189_p5) target bundleno = 429 (0x1ad), region = 32  ;;  %s504_s7 = sshll.u32 (!%p189_p5), %s841_s5, 3 }
  0x32   : > { %s195_s11 = scalar_lea.sflag (!%p189_p5), [#allocation3], %s841_s5  ;;  %s198_s9 = scalar_lea.vmem (!%p189_p5), [#allocation2], %s504_s7 }
  0x38   : > { %675 = dma.done.wait (%p777_p8), %s195_s11, 128  }
  0x39   : > { %677 = vsyncadd (%p777_p8), %s195_s11, 4294967168  ;;  %v707_v0 = vmov 0   ;;  %v331_v1 = vld [vmem:[%s933_s2] sm:$0xf]  ;;  %vm244_vm0 = vcmask 1043456   ;;  %p231_p8 = scmp.lt.s32.totalorder %s696_s15, 1  ;;  %v287_v21 = vlaneseq }
  0x3a   : > { %580 = vset.pattern.permute.xlu0 %v707_v0  ;;  %v239_v2 = vld [vmem:[%s198_s9] sm:$0xff]  ;;  %v708_v32 = vmov 0.0   ;;  %vm363_vm3 = vcmask 1040384   ;;  %s510_s22 = sshll.u32 %s696_s15, 7  ;;  %s228_s23 = scalar_lea.vmem [#allocation5], %s504_s7 }
  0x3b   : > { %334 = vperm.xlu0 %580, %v331_v1   ;;  %v242_v3 = vcombine.high %v239_v2, %v239_v2  ;;  %v245_v4 = vsel %vm244_vm0, %v239_v2, -inf  ;;  %s232_s24 = scalar_select %p231_p8, %s696_s15, 1  ;;  %v859_v22 = vshrl.u32 %v287_v21, 7 }
  0x3c   : > { %v246_v6 = vrot.slane %v245_v4, 4  ;;  %s399_s28 = sshll.u32 %s228_s23, 4  ;;  %s882_s11 = scalar_lea.hbm %s934_s3, %s510_s22  ;;  %s884_s28 = int_to_ptr.vmem [resolvable:$true] %s399_s28 }
  0x3d   : > { %v252_v5 = vsel %vm244_vm0, %v242_v3, -inf  ;;  %s506_s10 = sshll.u32 %s232_s24, 1  ;;  %v291_v23 = vsub.s32 0, %v859_v22  ;;  %v295_v24 = vsub.s32 1, %v859_v22  ;;  %vm378_vm4 = vcmp.eq.s32.totalorder %v859_v22, 0  ;;  %s385_s9 = scalar_lea.sflag [#allocation4], %s841_s5 }
  0x3e   : > { %v253_v7 = vrot.slane %v252_v5, 4  ;;  %v247_v8 = vmax.f32 %v245_v4, %v246_v6  ;;  %s237_s21 = scalar_lea.vmem %s932_s1, %s506_s10  ;;  %s622_s15 = scalar_lea.vmem %s884_s28, 128 }
  0x3f   : > { %v240_v25 = vld [vmem:[%s237_s21] sm:$0x3]  ;;  %p623_p9 = scmp.ne.s32.totalorder %s884_s28, %s622_s15  ;;  %p943_p11 = scmp.ne.s32.totalorder %s938_s25, 0 }
  0x40   : > { %v254_v9 = vmax.f32 %v252_v5, %v253_v7  ;;  %v248_v10 = vrot.slane %v247_v8, 2  ;;  %v292_v27 = vrot.slane %v240_v25, %v291_v23  ;;  %v296_v28 = vrot.slane %v240_v25, %v295_v24  ;;  %s709_s7 = smov [#allocation5]  }
  0x41   : > { %p624_p0 = pnand %p623_p9, %p943_p11  ;;  %s626_s6 = sshll.u32 %s709_s7, 4  ;;  %s627_s6 = int_to_ptr.vmem [resolvable:$false] %s626_s6 }
  0x42   : > { %v255_v11 = vrot.slane %v254_v9, 2  ;;  %v249_v12 = vmax.f32 %v247_v8, %v248_v10  ;;  %vm297_vm1 = vcmp.eq.s32.totalorder %v859_v22, %v292_v27  ;;  %vm298_vm2 = vcmp.eq.s32.totalorder %v859_v22, %v296_v28  ;;  %s628_s8 = scalar_lea.vmem %s627_s6, 256  ;;  %p629_p13 = scmp.lt.s32.totalorder %s884_s28, %s627_s6 }
  0x43   : > { %v507_v33 = vsel %vm297_vm1, 1.0, %v708_v32  ;;  %v508_v34 = vsel %vm298_vm2, 1.0, %v708_v32  ;;  %p625_p7 = pneg %p624_p0  ;;  %p630_p3 = scmp.lt.s32.totalorder %s628_s8, %s622_s15 }
  0x44   : > { %v256_v13 = vmax.f32 %v254_v9, %v255_v11  ;;  %v250_v14 = vrot.slane %v249_v12, 1  ;;  %v305_v37 = vcombine.low %v507_v33, %v508_v34 }
  0x45   : > { %p631_p6 = por %p630_p3, %p629_p13 }
  0x46   : > { %v257_v15 = vrot.slane %v256_v13, 1  ;;  %v251_v16 = vmax.f32 %v249_v12, %v250_v14 }
  0x47   : > { %p632_p4 = pnand %p631_p6, %p625_p7 }
  0x48   : > { %v258_v17 = vmax.f32 %v256_v13, %v257_v15 }
  0x4a   : > { %v261_v18 = vcombine.low %v251_v16, %v258_v17 }
  0x4c   : > { %v263_v19 = vsub.f32 %v239_v2, %v261_v18 }
  0x4e   : > { %v264_v20 = vmul.f32 1.442695, %v263_v19  ;;  %v307_v40 = vmul.f32 %v305_v37, %v263_v19 }
  0x50   : > { %582 = vpow2.f32 %v264_v20  ;;  %v309_v43 = vcombine.high %v307_v40, %v307_v40  ;;  %v311_v46 = vsel %vm244_vm0, %v307_v40, 0.0 }
  0x51   : > { %v312_v49 = vrot.slane %v311_v46, 4 }
  0x52   : > { %v318_v47 = vsel %vm244_vm0, %v309_v43, 0.0 }
  0x53   : > { %v319_v51 = vrot.slane %v318_v47, 4  ;;  %v313_v53 = vadd.f32 %v312_v49, %v311_v46  ;;  %v377_v49 = vand.u32 127, %v287_v21 }
  0x55   : > { %v320_v55 = vadd.f32 %v319_v51, %v318_v47  ;;  %v314_v56 = vrot.slane %v313_v53, 2  ;;  %vm379_vm5 = vcmp.eq.s32.totalorder %v377_v49, 0 }
  0x56   : > { %vm380_vm6 = vmand %vm378_vm4, %vm379_vm5 }
  0x57   : > { %v321_v57 = vrot.slane %v320_v55, 2  ;;  %v315_v58 = vadd.f32 %v314_v56, %v313_v53 }
  0x59   : > { %v322_v59 = vadd.f32 %v321_v57, %v320_v55  ;;  %v316_v60 = vrot.slane %v315_v58, 1 }
  0x5a   : > { %v583_v26 = vpop.eup %582 }
  0x5b   : > { %v267_v29 = vcombine.high %v583_v26, %v583_v26  ;;  %v269_v30 = vsel %vm244_vm0, %v583_v26, 0.0  ;;  %v323_v62 = vrot.slane %v322_v59, 1  ;;  %v317_v1 = vadd.f32 %v316_v60, %v315_v58 }
  0x5c   : > { %v270_v35 = vrot.slane %v269_v30, 4 }
  0x5d   : > { %v276_v31 = vsel %vm244_vm0, %v267_v29, 0.0  ;;  %v324_v3 = vadd.f32 %v323_v62, %v322_v59 }
  0x5e   : > { %v277_v36 = vrot.slane %v276_v31, 4  ;;  %v271_v38 = vadd.f32 %v270_v35, %v269_v30 }
  0x60   : > { %v278_v39 = vadd.f32 %v277_v36, %v276_v31  ;;  %v272_v41 = vrot.slane %v271_v38, 2 }
  0x62   : > { %v279_v42 = vrot.slane %v278_v39, 2  ;;  %v273_v44 = vadd.f32 %v272_v41, %v271_v38 }
  0x64   : > { %v280_v45 = vadd.f32 %v279_v42, %v278_v39  ;;  %v274_v48 = vrot.slane %v273_v44, 1 }
  0x66   : > { %v281_v50 = vrot.slane %v280_v45, 1  ;;  %v275_v52 = vadd.f32 %v274_v48, %v273_v44 }
  0x68   : > { %v282_v54 = vadd.f32 %v281_v50, %v280_v45  ;;  %584 = vlog2.f32 %v275_v52 }
  0x6a   : > { %586 = vlog2.f32 %v282_v54 }
  0x72   : > { %v585_v61 = vpop.eup %584 }
  0x73   : > { %v284_v0 = vmul.f32 0.6931472, %v585_v61 }
  0x74   : > { %v587_v63 = vpop.eup %586 }
  0x75   : > { %v286_v2 = vmul.f32 0.6931472, %v587_v63  ;;  %v325_v4 = vsub.f32 %v317_v1, %v284_v0 }
  0x77   : > { %v326_v5 = vsub.f32 %v324_v3, %v286_v2  ;;  %v327_v6 = vmul.f32 1.442695, %v325_v4 }
  0x79   : > { %v329_v7 = vmul.f32 1.442695, %v326_v5  ;;  %588 = vpow2.f32 %v327_v6 }
  0x7b   : > { %590 = vpow2.f32 %v329_v7 }
  0x83   : > { %v589_v11 = vpop.eup %588 }
  0x84   : > { %v355_v19 = vsub.f32 1.0, %v589_v11 }
  0x85   : > { %v591_v12 = vpop.eup %590 }
  0x86   : > { %v356_v20 = vsub.f32 1.0, %v591_v12  ;;  %v357_v27 = vmul.f32 %v355_v19, %v355_v19 }
  0x88   : > { %v358_v28 = vmul.f32 %v356_v20, %v356_v20 }
  0xba   : > { %v335_v8 = vpop.permute.xlu0 %334 }
  0xbb   : > { %v337_v9 = vmul.f32 %v507_v33, %v335_v8  ;;  %v338_v10 = vmul.f32 %v508_v34, %v335_v8  ;;  %v359_v33 = vmul.f32 -1.0, %v357_v27  ;;  %v360_v34 = vmul.f32 -1.0, %v358_v28 }
  0xbd   : > { %v339_v13 = vsel %vm244_vm0, %v337_v9, 0.0  ;;  %v346_v14 = vsel %vm244_vm0, %v338_v10, 0.0 }
  0xbe   : > { %v340_v15 = vrot.slane %v339_v13, 4  ;;  %v347_v16 = vrot.slane %v346_v14, 4 }
  0xc0   : > { %v341_v17 = vadd.f32 %v340_v15, %v339_v13  ;;  %v348_v18 = vadd.f32 %v347_v16, %v346_v14 }
  0xc2   : > { %v342_v23 = vrot.slane %v341_v17, 2  ;;  %v349_v24 = vrot.slane %v348_v18, 2 }
  0xc4   : > { %v343_v25 = vadd.f32 %v342_v23, %v341_v17  ;;  %v350_v26 = vadd.f32 %v349_v24, %v348_v18 }
  0xc6   : > { %v344_v29 = vrot.slane %v343_v25, 1  ;;  %v351_v30 = vrot.slane %v350_v26, 1 }
  0xc8   : > { %v345_v31 = vadd.f32 %v344_v29, %v343_v25  ;;  %v352_v32 = vadd.f32 %v351_v30, %v350_v26 }
  0xca   : > { %v353_v35 = vmul.f32 %v345_v31, %v325_v4  ;;  %v354_v36 = vmul.f32 %v352_v32, %v326_v5 }
  0xcc   : > { %v361_v37 = vmul.f32 %v359_v33, %v353_v35  ;;  %v362_v38 = vmul.f32 %v360_v34, %v354_v36 }
  0xce   : > { %v364_v39 = vsel %vm363_vm3, %v361_v37, 0.0  ;;  %v365_v40 = vsel %vm363_vm3, %v362_v38, 0.0 }
  0xcf   : > { %v366_v41 = vadd.f32 %v365_v40, %v364_v39 }
  0xd1   : > { %367 = vadd.xlane.f32.xlu0 %v366_v41 }
 0x15e   : > { %v368_v42 = vpop.xlane.xlu0 %367 }
 0x15f   : > { %v369_v43 = vrot.slane %v368_v42, 4 }
 0x161   : > { %v370_v44 = vadd.f32 %v369_v43, %v368_v42 }
 0x163   : > { %v371_v45 = vrot.slane %v370_v44, 2 }
 0x165   : > { %v372_v46 = vadd.f32 %v371_v45, %v370_v44 }
 0x167   : > { %v373_v47 = vrot.slane %v372_v46, 1 }
 0x169   : > { %v374_v48 = vadd.f32 %v373_v47, %v372_v46 }
 0x16b   : > { %514 = vpush %v374_v48 }
 0x19c   : > { %s515_s29 = spop %514 }
 0x19d   : > { %v381_v50 = vstv %s515_s29 }
 0x19e   : > { %v382_v21 = vsel %vm380_vm6, %v381_v50, 0.0 }
 0x19f   : > { %383 = vst [vmem:[%s228_s23] sm:$0xff] %v382_v21 }
 0x1a0   : > { %635 = shalt.err (!%p632_p4)
}
 0x1a1   : > { %s636_s5 = scalar_lea.hbm %s882_s11, 128  ;;  %s640_s18 = scalar_lea.hbm %s934_s3, 256 }
 0x1a2   : > { %p637_p10 = scmp.ne.s32.totalorder %s882_s11, %s636_s5  ;;  %p641_p2 = scmp.lt.u32.totalorder %s882_s11, %s934_s3 }
 0x1a3   : > { %p642_p5 = scmp.lt.u32.totalorder %s640_s18, %s636_s5  ;;  %p644_p9 = scmp.lt.u32.totalorder %s636_s5, %s882_s11 }
 0x1a4   : > { %p638_p12 = pnand %p637_p10, %p943_p11 }
 0x1a5   : > { %p643_p8 = por %p642_p5, %p641_p2 }
 0x1a6   : > { %p639_p1 = pneg %p638_p12 }
 0x1a7   : > { %p645_p0 = por %p644_p9, %p643_p8 }
 0x1a9   : > { %p646_p7 = pnand %p645_p0, %p639_p1 }
 0x1ab   : > { %649 = shalt.err (!%p646_p7)
}
 0x1ac   : > { %518 = dma.vmem_to_hbm [thread:$0]  (%p943_p11), %s884_s28, 128, %s882_s11, %s385_s9  }
 0x1ad PF: > { %s411_s22 = sand.u32 1, %s684_s12   ;;  %p944_p13 = scmp.ne.s32.totalorder %s939_s27, 0 }
 0x1ae   : > { %p945_p3 = scmp.ge.s32.totalorder %s704_s17, 2  ;;  %s412_s23 = scalar_lea.sflag [#allocation4], %s411_s22 }
 0x1b0   : > { %p525_p6 = pnand %p945_p3, %p944_p13 }
 0x1b2   : > { %679 = dma.done.wait (!%p525_p6), %s412_s23, 128  }
 0x1b3   : > { %681 = vsyncadd (!%p525_p6), %s412_s23, 4294967168  ;;  %s19_s17 = sadd.s32 1, %s704_s17   ;;  %s946_s12 = smov %s688_s13 }
 0x1b4   : > { %p16_p4 = scmp.ge.s32.totalorder %s19_s17, 4   ;;  %s947_s13 = smov %s692_s14 }
 0x1b5   : > { %s948_s14 = smov %s786_s26  ;;  %s949_s15 = smov %s700_s16 }
 0x1b6   : > { %s950_s16 = smov %s952_s20  ;;  %18 = sbr.rel (!%p16_p4) target bundleno = 6 (0x6), region = 80 }
 0x1bd   :  { %417 = vsyncpa [#allocation3], 1 }
 0x1be   :  { %419 = vsyncpa [#allocation3 + $0x1], 1 }
 0x1bf   :  { %420 = vsyncpa [#allocation4], 1 }
 0x1c0   :  { %422 = vsyncpa [#allocation4 + $0x1], 1 }

</bundles_post_ra>
